<compile_context>
chip_gen: v6e
topology: v6e:2x2x1
jax: 0.10.0
libtpu: 0.0.40
codegen_flags: <defaults>
</compile_context>

<pallas_src>
import functools

import jax
import jax.numpy as jnp
from jax.experimental import pallas as pl
from jax.experimental.pallas import tpu as pltpu


def _round_up(v, m):
    return (v + m - 1) // m * m


def _pick_tile(n_pad, max_tile=512):
    """Largest multiple of 128 that divides n_pad, capped at max_tile."""
    t = min(max_tile, n_pad)
    while n_pad % t:
        t -= 128
    return t


# ----------------------------------------------------------------------------
# Fused multi-layer GCN kernel
# ----------------------------------------------------------------------------
def fused_gcn_kernel(x_ref, a_ref, w_ref, b_ref, o_ref,
                     h_ref, z_ref, acc_ref, *,
                     num_layers, num_classes, tile):
    l = pl.program_id(0)            # layer
    i = pl.program_id(1)            # destination-node row tile
    k = pl.program_id(2)            # reduction tile over source nodes
    n_k = pl.num_programs(2)

    k0 = pl.multiple_of(k * tile, tile)

    # Per-layer feature transform z = h @ W_l, distributed over the i == 0
    # k-sweep (one (tile, f_pad) block per grid step) so the MXU / vld work is
    # spread evenly and the A-tile DMA pipeline is never stalled by a lumpy
    # layer-start step.
    @pl.when(i == 0)
    def _():
        @pl.when(l == 0)
        def _():
            # First layer: activations come from the (tiled) input features.
            h_ref[pl.ds(k0, tile), :] = x_ref[...]

        z_ref[pl.ds(k0, tile), :] = jnp.dot(
            h_ref[pl.ds(k0, tile), :], w_ref[0],
            preferred_element_type=jnp.float32).astype(z_ref.dtype)

    # Reduction over source-node tiles: acc += A[i, k] @ z[k].
    @pl.when(k == 0)
    def _():
        acc_ref[...] = jnp.zeros_like(acc_ref)

    acc_ref[...] += jnp.dot(
        a_ref[...], z_ref[pl.ds(k0, tile), :],
        preferred_element_type=jnp.float32)

    # Epilogue only on the final reduction step.
    last_k = k == n_k - 1
    row0 = pl.multiple_of(i * tile, tile)

    @pl.when(jnp.logical_and(last_k, l < num_layers - 1))
    def _():
        # Hidden layer: bias + relu, written back into the resident
        # activation h (no o_ref write: its contents are never consumed).
        act = jnp.maximum(acc_ref[...] + b_ref[0], 0.0)
        h_ref[pl.ds(row0, tile), :] = act.astype(h_ref.dtype)

    @pl.when(jnp.logical_and(last_k, l == num_layers - 1))
    def _():
        logits = acc_ref[...] + b_ref[0]
        # Mask padded class lanes before the softmax reductions.
        col = jax.lax.broadcasted_iota(jnp.int32, logits.shape, 1)
        masked = jnp.where(col < num_classes, logits, jnp.float32(-1e30))
        m = jnp.max(masked, axis=1, keepdims=True)
        s = masked - m
        lse = jnp.log(jnp.sum(jnp.exp(s), axis=1, keepdims=True))
        o_ref[...] = (s - lse).astype(o_ref.dtype)


def gcn_net_forward(x, a_hat, params, *, max_tile=512):
    """Fused GCN_Net forward (inference).  x: (N, F) f32, a_hat: (N, N) f32."""
    n, f_in = x.shape
    num_layers = len(params)
    num_classes = params[-1][0].shape[1]
    dims = [f_in] + [w.shape[1] for (w, _) in params]
    f_pad = _round_up(max(dims), 128)              # lane-dense feature width
    n_pad = _round_up(n, 128)
    tile = _pick_tile(n_pad, max_tile)             # clamps to n_pad when small

    # bf16 inputs (halved HBM/VMEM traffic, bf16 MXU rate), f32 accumulation.
    a_p = jnp.zeros((n_pad, n_pad), jnp.bfloat16).at[:n, :n].set(
        a_hat.astype(jnp.bfloat16))
    x_p = jnp.zeros((n_pad, f_pad), jnp.bfloat16).at[:n, :f_in].set(
        x.astype(jnp.bfloat16))
    w_p = jnp.stack([
        jnp.zeros((f_pad, f_pad), jnp.bfloat16)
        .at[:w.shape[0], :w.shape[1]].set(w.astype(jnp.bfloat16))
        for (w, _) in params])                      # (L, f_pad, f_pad)
    b_p = jnp.stack([
        jnp.zeros((1, f_pad), jnp.float32)
        .at[:, :b.shape[-1]].set(b.astype(jnp.float32))
        for (_, b) in params])                      # (L, 1, f_pad)

    grid = (num_layers, n_pad // tile, n_pad // tile)

    # VMEM budget: resident h + z + acc, plus double-buffered blocks, plus
    # headroom, capped below physical per-core VMEM (64 MiB v7x / 128 MiB
    # v5e/v6e).
    resident = 2 * n_pad * f_pad * 2 + tile * f_pad * 4
    buffered = 2 * (tile * tile * 2         # A tile
                    + tile * f_pad * 2      # x tile
                    + f_pad * f_pad * 2     # W_l
                    + f_pad * 4             # b_l
                    + tile * f_pad * 4)     # output block
    try:
        phys_vmem = pltpu.get_tpu_info().vmem_capacity_bytes
    except Exception:
        phys_vmem = 64 * 1024 * 1024
    vmem_limit = int(min(max(resident + buffered + (16 << 20), 32 << 20),
                         phys_vmem - (8 << 20)))

    flops = num_layers * (2 * n_pad * f_pad * f_pad + 2 * n_pad * n_pad * f_pad)
    bytes_accessed = (num_layers * n_pad * n_pad * 2        # A_hat per layer
                      + n_pad * f_pad * 2                    # x (once)
                      + num_layers * (f_pad * f_pad * 2 + f_pad * 4)  # W, b
                      + num_layers * n_pad * f_pad * 4)      # output writebacks
    cost = pl.CostEstimate(flops=flops, transcendentals=n_pad * f_pad,
                           bytes_accessed=bytes_accessed)

    kernel = functools.partial(fused_gcn_kernel, num_layers=num_layers,
                               num_classes=num_classes, tile=tile)

    def x_index_map(l, i, k):
        # Fetch x blocks only during the l==0, i==0 sweep; afterwards the
        # block index stays at 0 so no further DMA is issued.
        first = jnp.logical_and(l == 0, i == 0).astype(jnp.int32)
        return (k * first, 0)

    out_p = pl.pallas_call(
        kernel,
        out_shape=jax.ShapeDtypeStruct((n_pad, f_pad), jnp.float32),
        grid_spec=pltpu.PrefetchScalarGridSpec(
            num_scalar_prefetch=0,
            grid=grid,
            in_specs=[
                pl.BlockSpec((tile, f_pad), x_index_map),                    # x tile
                pl.BlockSpec((tile, tile), lambda l, i, k: (i, k)),          # A tile
                pl.BlockSpec((1, f_pad, f_pad), lambda l, i, k: (l, 0, 0)),  # W_l
                pl.BlockSpec((1, 1, f_pad), lambda l, i, k: (l, 0, 0)),      # b_l
            ],
            out_specs=pl.BlockSpec((tile, f_pad), lambda l, i, k: (i, 0)),
            scratch_shapes=[
                pltpu.VMEM((n_pad, f_pad), jnp.bfloat16),   # h: activation
                pltpu.VMEM((n_pad, f_pad), jnp.bfloat16),   # z: h @ W_l
                pltpu.VMEM((tile, f_pad), jnp.float32),     # f32 accumulator
            ]),
        compiler_params=pltpu.CompilerParams(
            # All axes carry state through VMEM scratch (h, z, acc) so they
            # must run sequentially on one core; megacore row-parallelism
            # would need per-core copies of h/z (see TODO at top).
            dimension_semantics=("arbitrary", "arbitrary", "arbitrary"),
            vmem_limit_bytes=vmem_limit),
        cost_estimate=cost,
    )(x_p, a_p, w_p, b_p)

    return out_p[:n, :num_classes]


# ----------------------------------------------------------------------------
# Glue (plain JAX): normalized adjacency, parameter init, reference
# ----------------------------------------------------------------------------
def build_normalized_adjacency(edge_index, num_nodes):
    """Dense PyG-style gcn_norm: messages flow src -> dst, degrees on dst side."""
    src, dst = edge_index[0], edge_index[1]
    a = jnp.zeros((num_nodes, num_nodes), jnp.float32)
    # Row = destination, column = source, so (A_hat @ x)[i] aggregates over
    # node i's *incoming* edges -- matches PyG GCNConv for directed graphs.
    a = a.at[dst, src].set(1.0)
    a = a + jnp.eye(num_nodes, dtype=jnp.float32)          # add self loops
    deg = jnp.sum(a, axis=1)                               # in-degree (incl. loop)
    d_inv_sqrt = jnp.where(deg > 0, 1.0 / jnp.sqrt(deg), 0.0)
    return d_inv_sqrt[:, None] * a * d_inv_sqrt[None, :]


def glorot(key, fan_in, fan_out):
    limit = jnp.sqrt(6.0 / (fan_in + fan_out))
    return jax.random.uniform(key, (fan_in, fan_out), jnp.float32,
                              minval=-limit, maxval=limit)


def init_gcn_params(key, num_features, hidden, num_classes, num_layers):
    dims = [num_features] + [hidden] * (num_layers - 1) + [num_classes]
    params = []
    for i in range(num_layers):
        key, wk = jax.random.split(key)
        w = glorot(wk, dims[i], dims[i + 1])
        b = jnp.zeros((1, dims[i + 1]), jnp.float32)
        params.append((w, b))
    return params


def gcn_reference(x, a_hat, params):
    """Pure-JAX f32 reference of the same forward (for correctness check)."""
    h = x
    for i, (w, b) in enumerate(params):
        h = a_hat @ (h @ w) + b
        if i < len(params) - 1:
            h = jnp.maximum(h, 0.0)
    return jax.nn.log_softmax(h, axis=1)


# ----------------------------------------------------------------------------
# Main
# ----------------------------------------------------------------------------
if __name__ == "__main__":
    key = jax.random.PRNGKey(0)

    num_nodes = 32
    num_features = 16
    hidden = 32
    num_classes = 8
    num_layers = 3
    # dropout: inference mode -> identity (no kernel needed).

    k_x, k_p = jax.random.split(key)
    x = jax.random.normal(k_x, (num_nodes, num_features), jnp.float32)

    # Deterministic edge set: bidirectional ring + a few directed chords
    # (exercises the src->dst aggregation orientation).
    idx = jnp.arange(num_nodes, dtype=jnp.int32)
    src = jnp.concatenate([idx, (idx + 1) % num_nodes, idx[::4]])
    dst = jnp.concatenate([(idx + 1) % num_nodes, idx, (idx[::4] + 5) % num_nodes])
    edge_index = jnp.stack([src, dst], axis=0)

    a_hat = build_normalized_adjacency(edge_index, num_nodes)
    params = init_gcn_params(k_p, num_features, hidden, num_classes, num_layers)

    fwd = jax.jit(functools.partial(gcn_net_forward, max_tile=512))
    out = jax.block_until_ready(fwd(x, a_hat, params))

    assert out.shape == (num_nodes, num_classes)
    # Rows must be valid log-probabilities.
    row_prob_sum = jnp.sum(jnp.exp(out), axis=1)
    assert bool(jnp.all(jnp.abs(row_prob_sum - 1.0) < 1e-4))
    # Cross-check against the pure-JAX f32 reference (bf16 matmul inputs ->
    # loose tolerance; re-validate before any 8-bit A quantization).
    ref = gcn_reference(x, a_hat, params)
    assert bool(jnp.max(jnp.abs(out - ref)) < 0.1)

    print("KERNEL_OK")
</pallas_src>

<mosaic_0001>
module attributes {stable_mosaic.version = 11 : i64} {
  func.func @fused_gcn_kernel(%arg0: i32, %arg1: i32, %arg2: i32, %arg3: memref<128x128xbf16, #tpu.memory_space<vmem>>, %arg4: memref<128x128xbf16, #tpu.memory_space<vmem>>, %arg5: memref<1x128x128xbf16, #tpu.memory_space<vmem>>, %arg6: memref<1x1x128xf32, #tpu.memory_space<vmem>>, %arg7: memref<128x128xf32, #tpu.memory_space<vmem>>, %arg8: memref<128x128xbf16, #tpu.memory_space<vmem>>, %arg9: memref<128x128xbf16, #tpu.memory_space<vmem>>, %arg10: memref<128x128xf32, #tpu.memory_space<vmem>>) attributes {dimension_semantics = [#tpu.dimension_semantics<arbitrary>, #tpu.dimension_semantics<arbitrary>, #tpu.dimension_semantics<arbitrary>], iteration_bounds = array<i64: 3, 1, 1>, scalar_prefetch = 0 : i64, scratch_operands = 3 : i64, tpu.core_type = #tpu.core_type<tc>, window_params = [{transform_indices = @transform_0, window_bounds = array<i64: 128, 128>}, {transform_indices = @transform_1, window_bounds = array<i64: 128, 128>}, {transform_indices = @transform_2, window_bounds = array<i64: 1, 128, 128>}, {transform_indices = @transform_3, window_bounds = array<i64: 1, 1, 128>}, {transform_indices = @transform_4, window_bounds = array<i64: 128, 128>}]} {
    %c128_i32 = arith.constant 128 : i32
    %0 = arith.muli %arg2, %c128_i32 : i32
    %1 = tpu.assume_multiple %0, 128 : i32
    %c0_i32 = arith.constant 0 : i32
    %2 = arith.cmpi eq, %arg1, %c0_i32 : i32
    %3 = arith.extui %2 : i1 to i32
    %c0_i32_0 = arith.constant 0 : i32
    %4 = arith.cmpi ne, %3, %c0_i32_0 : i32
    scf.if %4 {
      %c0_i32_14 = arith.constant 0 : i32
      %26 = arith.cmpi eq, %arg0, %c0_i32_14 : i32
      %27 = arith.extui %26 : i1 to i32
      %c0_i32_15 = arith.constant 0 : i32
      %28 = arith.cmpi ne, %27, %c0_i32_15 : i32
      scf.if %28 {
        %c0_22 = arith.constant 0 : index
        %c0_23 = arith.constant 0 : index
        %37 = vector.load %arg3[%c0_22, %c0_23] : memref<128x128xbf16, #tpu.memory_space<vmem>>, vector<128x128xbf16>
        %38 = arith.index_cast %1 : i32 to index
        %c0_24 = arith.constant 0 : index
        %39 = vector.load %arg8[%38, %c0_24] : memref<128x128xbf16, #tpu.memory_space<vmem>>, vector<128x128xbf16>
        tpu.vector_store %arg8[%38, %c0_24], %37 {strides = array<i32>} : memref<128x128xbf16, #tpu.memory_space<vmem>>, vector<128x128xbf16>,
      } else {
      }
      %29 = arith.index_cast %1 : i32 to index
      %c0_16 = arith.constant 0 : index
      %30 = vector.load %arg8[%29, %c0_16] : memref<128x128xbf16, #tpu.memory_space<vmem>>, vector<128x128xbf16>
      %c0_17 = arith.constant 0 : index
      %c0_18 = arith.constant 0 : index
      %c0_19 = arith.constant 0 : index
      %31 = vector.load %arg5[%c0_17, %c0_18, %c0_19] : memref<1x128x128xbf16, #tpu.memory_space<vmem>>, vector<1x128x128xbf16>
      %32 = vector.shape_cast %31 : vector<1x128x128xbf16> to vector<128x128xbf16>
      %cst_20 = arith.constant dense<0.000000e+00> : vector<128x128xf32>
      %33 = tpu.matmul %30, %32, %cst_20 {dimension_numbers = #tpu.dot_dimension_numbers<[1], [0], [0], [1], [0, 0, 1, 1], [], []>} : vector<128x128xbf16>, vector<128x128xbf16>, vector<128x128xf32> -> vector<128x128xf32>
      %34 = arith.truncf %33 : vector<128x128xf32> to vector<128x128xbf16>
      %35 = arith.index_cast %1 : i32 to index
      %c0_21 = arith.constant 0 : index
      %36 = vector.load %arg9[%35, %c0_21] : memref<128x128xbf16, #tpu.memory_space<vmem>>, vector<128x128xbf16>
      tpu.vector_store %arg9[%35, %c0_21], %34 {strides = array<i32>} : memref<128x128xbf16, #tpu.memory_space<vmem>>, vector<128x128xbf16>,
    } else {
    }
    %c0_i32_1 = arith.constant 0 : i32
    %5 = arith.cmpi eq, %arg2, %c0_i32_1 : i32
    %6 = arith.extui %5 : i1 to i32
    %c0_i32_2 = arith.constant 0 : i32
    %7 = arith.cmpi ne, %6, %c0_i32_2 : i32
    scf.if %7 {
      %cst_14 = arith.constant 0.000000e+00 : f32
      %26 = vector.broadcast %cst_14 : f32 to vector<128x128xf32>
      %c0_15 = arith.constant 0 : index
      %c0_16 = arith.constant 0 : index
      %27 = vector.load %arg10[%c0_15, %c0_16] : memref<128x128xf32, #tpu.memory_space<vmem>>, vector<128x128xf32>
      tpu.vector_store %arg10[%c0_15, %c0_16], %26 {strides = array<i32>} : memref<128x128xf32, #tpu.memory_space<vmem>>, vector<128x128xf32>,
    } else {
    }
    %c0 = arith.constant 0 : index
    %c0_3 = arith.constant 0 : index
    %8 = vector.load %arg10[%c0, %c0_3] : memref<128x128xf32, #tpu.memory_space<vmem>>, vector<128x128xf32>
    %c0_4 = arith.constant 0 : index
    %c0_5 = arith.constant 0 : index
    %9 = vector.load %arg4[%c0_4, %c0_5] : memref<128x128xbf16, #tpu.memory_space<vmem>>, vector<128x128xbf16>
    %10 = arith.index_cast %1 : i32 to index
    %c0_6 = arith.constant 0 : index
    %11 = vector.load %arg9[%10, %c0_6] : memref<128x128xbf16, #tpu.memory_space<vmem>>, vector<128x128xbf16>
    %cst = arith.constant dense<0.000000e+00> : vector<128x128xf32>
    %12 = tpu.matmul %9, %11, %cst {dimension_numbers = #tpu.dot_dimension_numbers<[1], [0], [0], [1], [0, 0, 1, 1], [], []>} : vector<128x128xbf16>, vector<128x128xbf16>, vector<128x128xf32> -> vector<128x128xf32>
    %13 = arith.addf %8, %12 : vector<128x128xf32>
    %c0_7 = arith.constant 0 : index
    %c0_8 = arith.constant 0 : index
    %14 = vector.load %arg10[%c0_7, %c0_8] : memref<128x128xf32, #tpu.memory_space<vmem>>, vector<128x128xf32>
    tpu.vector_store %arg10[%c0_7, %c0_8], %13 {strides = array<i32>} : memref<128x128xf32, #tpu.memory_space<vmem>>, vector<128x128xf32>,
    %c0_i32_9 = arith.constant 0 : i32
    %15 = arith.cmpi eq, %arg2, %c0_i32_9 : i32
    %c128_i32_10 = arith.constant 128 : i32
    %16 = arith.muli %arg1, %c128_i32_10 : i32
    %17 = tpu.assume_multiple %16, 128 : i32
    %c2_i32 = arith.constant 2 : i32
    %18 = arith.cmpi slt, %arg0, %c2_i32 : i32
    %19 = arith.andi %15, %18 : i1
    %20 = arith.extui %19 : i1 to i32
    %c0_i32_11 = arith.constant 0 : i32
    %21 = arith.cmpi ne, %20, %c0_i32_11 : i32
    scf.if %21 {
      %c0_14 = arith.constant 0 : index
      %c0_15 = arith.constant 0 : index
      %26 = vector.load %arg10[%c0_14, %c0_15] : memref<128x128xf32, #tpu.memory_space<vmem>>, vector<128x128xf32>
      %c0_16 = arith.constant 0 : index
      %c0_17 = arith.constant 0 : index
      %c0_18 = arith.constant 0 : index
      %27 = vector.load %arg6[%c0_16, %c0_17, %c0_18] : memref<1x1x128xf32, #tpu.memory_space<vmem>>, vector<1x1x128xf32>
      %28 = vector.shape_cast %27 : vector<1x1x128xf32> to vector<1x128xf32>
      %29 = vector.broadcast %28 : vector<1x128xf32> to vector<128x128xf32>
      %30 = arith.addf %26, %29 : vector<128x128xf32>
      %cst_19 = arith.constant 0.000000e+00 : f32
      %31 = vector.broadcast %cst_19 : f32 to vector<128x128xf32>
      %32 = arith.maximumf %30, %31 : vector<128x128xf32>
      %33 = arith.truncf %32 : vector<128x128xf32> to vector<128x128xbf16>
      %34 = arith.index_cast %17 : i32 to index
      %c0_20 = arith.constant 0 : index
      %35 = vector.load %arg8[%34, %c0_20] : memref<128x128xbf16, #tpu.memory_space<vmem>>, vector<128x128xbf16>
      tpu.vector_store %arg8[%34, %c0_20], %33 {strides = array<i32>} : memref<128x128xbf16, #tpu.memory_space<vmem>>, vector<128x128xbf16>,
    } else {
    }
    %c2_i32_12 = arith.constant 2 : i32
    %22 = arith.cmpi eq, %arg0, %c2_i32_12 : i32
    %23 = arith.andi %15, %22 : i1
    %24 = arith.extui %23 : i1 to i32
    %c0_i32_13 = arith.constant 0 : i32
    %25 = arith.cmpi ne, %24, %c0_i32_13 : i32
    scf.if %25 {
      %c0_14 = arith.constant 0 : index
      %c0_15 = arith.constant 0 : index
      %26 = vector.load %arg10[%c0_14, %c0_15] : memref<128x128xf32, #tpu.memory_space<vmem>>, vector<128x128xf32>
      %c0_16 = arith.constant 0 : index
      %c0_17 = arith.constant 0 : index
      %c0_18 = arith.constant 0 : index
      %27 = vector.load %arg6[%c0_16, %c0_17, %c0_18] : memref<1x1x128xf32, #tpu.memory_space<vmem>>, vector<1x1x128xf32>
      %28 = vector.shape_cast %27 : vector<1x1x128xf32> to vector<1x128xf32>
      %29 = vector.broadcast %28 : vector<1x128xf32> to vector<128x128xf32>
      %30 = arith.addf %26, %29 : vector<128x128xf32>
      %31 = tpu.iota {dimensions = array<i32: 1>} : vector<128x128xi32>
      %c8_i32 = arith.constant 8 : i32
      %32 = vector.broadcast %c8_i32 : i32 to vector<128x128xi32>
      %33 = arith.cmpi slt, %31, %32 : vector<128x128xi32>
      %cst_19 = arith.constant -1.000000e+30 : f32
      %34 = vector.broadcast %cst_19 : f32 to vector<128x128xf32>
      %35 = arith.select %33, %30, %34 : vector<128x128xi1>, vector<128x128xf32>
      %cst_20 = arith.constant dense<0xFF800000> : vector<128xf32>
      %36 = vector.multi_reduction <maximumf>, %35, %cst_20 [1] : vector<128x128xf32> to vector<128xf32>
      %37 = vector.shape_cast %36 : vector<128xf32> to vector<128x1xf32>
      %38 = vector.broadcast %37 : vector<128x1xf32> to vector<128x128xf32>
      %39 = arith.subf %35, %38 : vector<128x128xf32>
      %40 = math.exp %39 : vector<128x128xf32>
      %cst_21 = arith.constant dense<0.000000e+00> : vector<128xf32>
      %41 = vector.multi_reduction <add>, %40, %cst_21 [1] : vector<128x128xf32> to vector<128xf32>
      %42 = vector.shape_cast %41 : vector<128xf32> to vector<128x1xf32>
      %43 = math.log %42 : vector<128x1xf32>
      %44 = vector.broadcast %43 : vector<128x1xf32> to vector<128x128xf32>
      %45 = arith.subf %39, %44 : vector<128x128xf32>
      %c0_22 = arith.constant 0 : index
      %c0_23 = arith.constant 0 : index
      %46 = vector.load %arg7[%c0_22, %c0_23] : memref<128x128xf32, #tpu.memory_space<vmem>>, vector<128x128xf32>
      tpu.vector_store %arg7[%c0_22, %c0_23], %45 {strides = array<i32>} : memref<128x128xf32, #tpu.memory_space<vmem>>, vector<128x128xf32>,
    } else {
    }
    return
  }
  func.func @transform_0(%arg0: i32, %arg1: i32, %arg2: i32) -> (i32, i32) {
    %c0_i32 = arith.constant 0 : i32
    %0 = arith.cmpi eq, %arg0, %c0_i32 : i32
    %c0_i32_0 = arith.constant 0 : i32
    %1 = arith.cmpi eq, %arg1, %c0_i32_0 : i32
    %2 = arith.andi %0, %1 : i1
    %3 = arith.extui %2 : i1 to i32
    %4 = arith.muli %arg2, %3 : i32
    %c0_i32_1 = arith.constant 0 : i32
    %c0_i32_2 = arith.constant 0 : i32
    return %4, %c0_i32_1 : i32, i32
  }
  func.func @transform_1(%arg0: i32, %arg1: i32, %arg2: i32) -> (i32, i32) {
    %c0_i32 = arith.constant 0 : i32
    return %arg1, %arg2 : i32, i32
  }
  func.func @transform_2(%arg0: i32, %arg1: i32, %arg2: i32) -> (i32, i32, i32) {
    %c0_i32 = arith.constant 0 : i32
    %c0_i32_0 = arith.constant 0 : i32
    %c0_i32_1 = arith.constant 0 : i32
    return %arg0, %c0_i32, %c0_i32_0 : i32, i32, i32
  }
  func.func @transform_3(%arg0: i32, %arg1: i32, %arg2: i32) -> (i32, i32, i32) {
    %c0_i32 = arith.constant 0 : i32
    %c0_i32_0 = arith.constant 0 : i32
    %c0_i32_1 = arith.constant 0 : i32
    return %arg0, %c0_i32, %c0_i32_0 : i32, i32, i32
  }
  func.func @transform_4(%arg0: i32, %arg1: i32, %arg2: i32) -> (i32, i32) {
    %c0_i32 = arith.constant 0 : i32
    %c0_i32_0 = arith.constant 0 : i32
    return %arg1, %c0_i32 : i32, i32
  }
}

</mosaic_0001>

<bundles_post_ra>
// kernel: gcn_net_forward.1
= control target key start
LH: loop header
LB: loop body
LE: loop exit
PB: predicated region body
PF: predicated region fallthrough
CT: control target
= control target key end

     0   :  { %s1963_s15 = smov 0   ;;  %s1965_s16 = smov 0   ;;  %s2212_s0 = inlined_call_operand.vmem [shape: bf16[128,128], index: 0, kind: input, shape index: {}]   ;;  %s2213_s1 = inlined_call_operand.vmem [shape: bf16[128,128], index: 1, kind: input, shape index: {}]   ;;  %s2214_s2 = inlined_call_operand.vmem [shape: bf16[3,128,128], index: 2, kind: input, shape index: {}]   ;;  %s2215_s3 = inlined_call_operand.vmem [shape: f32[3,1,128], index: 3, kind: input, shape index: {}]   ;;  %s2216_s4 = inlined_call_operand.vmem [shape: f32[128,128], index: 4, kind: output, shape index: {}]  }
   0x1   :  { %s1967_s17 = smov 0  }
   0x2 LB: > { %s33_s18 = sadd.s32 1, %s1932_s16  ;;  %p1488_p0 = scmp.ge.s32.totalorder %s1936_s17, 1  ;;  %s1936_s17 = sphi %s1967_s17, %s14_s17   ;;  %s1932_s16 = sphi %s1965_s16, %s2218_s16   ;;  %s1928_s15 = sphi %s1963_s15, %s2217_s15  }
   0x3   : > { %p35_p1 = scmp.ge.s32.totalorder %s33_s18, 3  ;;  %p240_p2 = scmp.lt.s32.totalorder %s1936_s17, 4 }
   0x5   : > { %s2220_s18 = smov (%p35_p1, %s33_s18), 0  ;;  %p241_p3 = pnand %p1488_p0, %p240_p2 }
   0x6   : > { %p315_p4 = scmp.lt.s32.totalorder (!%p241_p3), %s1928_s15, 2  ;;  %p1492_p5 = scmp.ne.s32.totalorder (!%p241_p3), %s1928_s15, 0 }
   0x7   : > { %244 = sbr.rel (%p241_p3) target bundleno = 909 (0x38d), region = 36 }
   0xc   : > { %s316_s19 = scalar_select %p315_p4, %s1928_s15, 2 }
   0xd   : > { %338 = sbr.rel (%p1492_p5) target bundleno = 23 (0x17), region = 44 }
   0xe   : > { %s1568_s20 = sshll.u32 %s316_s19, 6  ;;  %s1990_s23 = scalar_lea.vmem %s2215_s3, %s316_s19 }
   0xf   : > { %s1995_s26 = scalar_lea.vmem %s2214_s2, %s1568_s20 }
  0x12   : > { %v339_v0 = vld [vmem:[%s2212_s0] sm:$0xff]   ;;  %v341_v1 = vld [vmem:[%s2212_s0 + $0x8] sm:$0xff]   ;;  %v343_v2 = vld [vmem:[%s2212_s0 + $0x10] sm:$0xff]  }
  0x13   : > { %359 = vst [vmem:[#allocation2] sm:$0xff] %v339_v0   ;;  %361 = vst [vmem:[#allocation2 + $0x8] sm:$0xff] %v341_v1   ;;  %v345_v3 = vld [vmem:[%s2212_s0 + $0x18] sm:$0xff]   ;;  %v347_v4 = vld [vmem:[%s2212_s0 + $0x20] sm:$0xff]  }
  0x14   : > { %363 = vst [vmem:[#allocation2 + $0x10] sm:$0xff] %v343_v2   ;;  %v349_v5 = vld [vmem:[%s2212_s0 + $0x28] sm:$0xff]   ;;  %365 = vst [vmem:[#allocation2 + $0x18] sm:$0xff] %v345_v3   ;;  %v351_v6 = vld [vmem:[%s2212_s0 + $0x30] sm:$0xff]  }
  0x15   : > { %367 = vst [vmem:[#allocation2 + $0x20] sm:$0xff] %v347_v4   ;;  %369 = vst [vmem:[#allocation2 + $0x28] sm:$0xff] %v349_v5   ;;  %v353_v7 = vld [vmem:[%s2212_s0 + $0x38] sm:$0xff]  }
  0x16   : > { %371 = vst [vmem:[#allocation2 + $0x30] sm:$0xff] %v351_v6   ;;  %373 = vst [vmem:[#allocation2 + $0x38] sm:$0xff] %v353_v7  }
  0x17 PF: > { %v1818_v8 = vld [vmem:[%s1995_s26 + $0x38] sm:$0xff]   ;;  %v1819_v9 = vld [vmem:[%s1995_s26 + $0x30] sm:$0xff]   ;;  %v1820_v10 = vld [vmem:[%s1995_s26 + $0x28] sm:$0xff]  }
  0x18   : > { %1729 = vmatprep.subr.bf16.mxu0 %v1818_v8  ;;  %v1821_v11 = vld [vmem:[%s1995_s26 + $0x20] sm:$0xff]   ;;  %v1822_v13 = vld [vmem:[%s1995_s26 + $0x18] sm:$0xff]   ;;  %v1823_v14 = vld [vmem:[%s1995_s26 + $0x10] sm:$0xff]  }
  0x19   : > { %1730 = vmatpush3.bf16.msra.mxu0 %v1818_v8  ;;  %v1824_v15 = vld [vmem:[%s1995_s26 + $0x8] sm:$0xff]   ;;  %v1825_v16 = vld [vmem:[%s1995_s26] sm:$0xff]   ;;  %v1844_v58 = vld [vmem:[%s2213_s1 + $0x10] sm:$0xff]  }
  0x1a   : > { %1731 = vmatprep.subr.bf16.mxu0 %v1819_v9  ;;  %v1826_v12 = vld [vmem:[#allocation2] sm:$0xff]   ;;  %v1827_v17 = vld [vmem:[#allocation2 + $0x8] sm:$0xff]   ;;  %v1845_v59 = vld [vmem:[%s2213_s1 + $0x18] sm:$0xff]  }
  0x1b   : > { %1745 = vmatprep.mubr.bf16.mxu0 %v1826_v12  ;;  %v1828_v18 = vld [vmem:[#allocation2 + $0x10] sm:$0xff]   ;;  %v1829_v19 = vld [vmem:[#allocation2 + $0x18] sm:$0xff]   ;;  %v1842_v24 = vld [vmem:[%s2213_s1] sm:$0xff]  }
  0x1c   : > { %v1830_v20 = vld [vmem:[#allocation2 + $0x20] sm:$0xff]   ;;  %v1831_v21 = vld [vmem:[#allocation2 + $0x28] sm:$0xff]   ;;  %1777 = vmatprep.mubr.bf16.mxu1 %v1842_v24  ;;  %v1848_v62 = vld [vmem:[%s2213_s1 + $0x30] sm:$0xff]  }
  0x1d   : > { %1732 = vmatpush3.bf16.msra.mxu0 %v1819_v9  ;;  %v1832_v22 = vld [vmem:[#allocation2 + $0x30] sm:$0xff]   ;;  %v1833_v23 = vld [vmem:[#allocation2 + $0x38] sm:$0xff]   ;;  %v1843_v57 = vld [vmem:[%s2213_s1 + $0x8] sm:$0xff]  }
  0x1e   : > { %1733 = vmatprep.subr.bf16.mxu0 %v1820_v10  ;;  %v1846_v60 = vld [vmem:[%s2213_s1 + $0x20] sm:$0xff]   ;;  %v1847_v61 = vld [vmem:[%s2213_s1 + $0x28] sm:$0xff]   ;;  %v1849_v63 = vld [vmem:[%s2213_s1 + $0x38] sm:$0xff]  }
  0x21   : > { %1734 = vmatpush3.bf16.msra.mxu0 %v1820_v10 }
  0x22   : > { %1735 = vmatprep.subr.bf16.mxu0 %v1821_v11 }
  0x25   : > { %1736 = vmatpush3.bf16.msra.mxu0 %v1821_v11 }
  0x26   : > { %1737 = vmatprep.subr.bf16.mxu0 %v1822_v13 }
  0x29   : > { %1738 = vmatpush3.bf16.msra.mxu0 %v1822_v13 }
  0x2a   : > { %1739 = vmatprep.subr.bf16.mxu0 %v1823_v14 }
  0x2d   : > { %1740 = vmatpush3.bf16.msra.mxu0 %v1823_v14 }
  0x2e   : > { %1741 = vmatprep.subr.bf16.mxu0 %v1824_v15 }
  0x31   : > { %1742 = vmatpush3.bf16.msra.mxu0 %v1824_v15 }
  0x32   : > { %1743 = vmatprep.subr.bf16.mxu0 %v1825_v16 }
  0x35   : > { %1744 = vmatpush3.bf16.msra.mxu0 %v1825_v16 }
  0x38   : > { %1746 = vmatmul.mubr.bf16.vlgmr.msra.gmra.mxu0 %v1827_v17 }
  0x39   : > { %1749 = vmatprep.mubr.bf16.mxu0 %v1828_v18  ;;  %v1542_v18 = vld [vmem:[%s1990_s23] ss:$0 sm:$0xff] (%p315_p4) }
  0x40   : > { %1750 = vmatmul.mubr.bf16.gmra.mxu0 %v1829_v19 }
  0x41   : > { %1753 = vmatprep.mubr.bf16.mxu0 %v1830_v20 }
  0x48   : > { %1754 = vmatmul.mubr.bf16.gmra.mxu0 %v1831_v21 }
  0x49   : > { %1757 = vmatprep.mubr.bf16.mxu0 %v1832_v22 }
  0x50   : > { %1758 = vmatmul.mubr.bf16.gmra.mxu0 %v1833_v23 }
  0xf8   : > { %v1747_v25 = vpop.f32.mrf.mxu0 }
  0xfa   : > { %v541_v26 = vpop.f32.mrf.mxu0 }
  0xfc   : > { %v1748_v27 = vpop.f32.mrf.mxu0 }
  0xfd   : > { %v1611_v28 = vpack.c.bf16 %v1748_v27, %v1747_v25 }
  0xfe   : > { %v544_v29 = vpop.f32.mrf.mxu0 }
  0xff   : > { %1683 = vst [vmem:[#allocation3 + $0x8] sm:$0xff] %v1611_v28   ;;  %v1606_v30 = vpack.c.bf16 %v544_v29, %v541_v26 }
 0x100   : > { %v1751_v31 = vpop.f32.mrf.mxu0 }
 0x101   : > { %1607 = vst [vmem:[#allocation3] sm:$0xff] %v1606_v30  }
 0x102   : > { %v557_v32 = vpop.f32.mrf.mxu0 }
 0x104   : > { %v1752_v33 = vpop.f32.mrf.mxu0 }
 0x105   : > { %v1621_v34 = vpack.c.bf16 %v1752_v33, %v1751_v31 }
 0x106   : > { %v560_v35 = vpop.f32.mrf.mxu0  ;;  %v1840_v55 = vld [vmem:[#allocation3 + $0x8] sm:$0xff]  }
 0x107   : > { %1685 = vst [vmem:[#allocation3 + $0x18] sm:$0xff] %v1621_v34   ;;  %v1616_v36 = vpack.c.bf16 %v560_v35, %v557_v32 }
 0x108   : > { %v1755_v37 = vpop.f32.mrf.mxu0  ;;  %v1841_v56 = vld [vmem:[#allocation3] sm:$0xff]  }
 0x109   : > { %1684 = vst [vmem:[#allocation3 + $0x10] sm:$0xff] %v1616_v36  }
 0x10a   : > { %v573_v38 = vpop.f32.mrf.mxu0 }
 0x10c   : > { %v1756_v39 = vpop.f32.mrf.mxu0 }
 0x10d   : > { %v1631_v40 = vpack.c.bf16 %v1756_v39, %v1755_v37 }
 0x10e   : > { %v576_v41 = vpop.f32.mrf.mxu0  ;;  %v1838_v53 = vld [vmem:[#allocation3 + $0x18] sm:$0xff]  }
 0x10f   : > { %1687 = vst [vmem:[#allocation3 + $0x28] sm:$0xff] %v1631_v40   ;;  %v1626_v42 = vpack.c.bf16 %v576_v41, %v573_v38 }
 0x110   : > { %v1759_v43 = vpop.f32.mrf.mxu0  ;;  %v1839_v54 = vld [vmem:[#allocation3 + $0x10] sm:$0xff]  }
 0x111   : > { %1686 = vst [vmem:[#allocation3 + $0x20] sm:$0xff] %v1626_v42  }
 0x112   : > { %v589_v44 = vpop.f32.mrf.mxu0 }
 0x114   : > { %v1760_v45 = vpop.f32.mrf.mxu0 }
 0x115   : > { %v1641_v46 = vpack.c.bf16 %v1760_v45, %v1759_v43 }
 0x116   : > { %v592_v47 = vpop.f32.mrf.mxu0  ;;  %v1836_v51 = vld [vmem:[#allocation3 + $0x28] sm:$0xff]  }
 0x117   : > { %1689 = vst [vmem:[#allocation3 + $0x38] sm:$0xff] %v1641_v46   ;;  %v1636_v48 = vpack.c.bf16 %v592_v47, %v589_v44 }
 0x118   : > { %v1837_v52 = vld [vmem:[#allocation3 + $0x20] sm:$0xff]  }
 0x119   : > { %1688 = vst [vmem:[#allocation3 + $0x30] sm:$0xff] %v1636_v48  }
 0x11e   : > { %v1834_v49 = vld [vmem:[#allocation3 + $0x38] sm:$0xff]  }
 0x11f   : > { %1761 = vmatprep.subr.bf16.mxu1 %v1834_v49 }
 0x120   : > { %v1835_v50 = vld [vmem:[#allocation3 + $0x30] sm:$0xff]   ;;  %1762 = vmatpush3.bf16.msra.mxu1 %v1834_v49 }
 0x121   : > { %1763 = vmatprep.subr.bf16.mxu1 %v1835_v50 }
 0x124   : > { %1764 = vmatpush3.bf16.msra.mxu1 %v1835_v50 }
 0x125   : > { %1765 = vmatprep.subr.bf16.mxu1 %v1836_v51 }
 0x128   : > { %1766 = vmatpush3.bf16.msra.mxu1 %v1836_v51 }
 0x129   : > { %1767 = vmatprep.subr.bf16.mxu1 %v1837_v52 }
 0x12c   : > { %1768 = vmatpush3.bf16.msra.mxu1 %v1837_v52 }
 0x12d   : > { %1769 = vmatprep.subr.bf16.mxu1 %v1838_v53 }
 0x130   : > { %1770 = vmatpush3.bf16.msra.mxu1 %v1838_v53 }
 0x131   : > { %1771 = vmatprep.subr.bf16.mxu1 %v1839_v54 }
 0x134   : > { %1772 = vmatpush3.bf16.msra.mxu1 %v1839_v54 }
 0x135   : > { %1773 = vmatprep.subr.bf16.mxu1 %v1840_v55 }
 0x138   : > { %1774 = vmatpush3.bf16.msra.mxu1 %v1840_v55 }
 0x139   : > { %1775 = vmatprep.subr.bf16.mxu1 %v1841_v56 }
 0x13c   : > { %1776 = vmatpush3.bf16.msra.mxu1 %v1841_v56 }
 0x13f   : > { %1778 = vmatmul.mubr.bf16.vlgmr.msra.gmra.mxu1 %v1843_v57 }
 0x140   : > { %1781 = vmatprep.mubr.bf16.mxu1 %v1844_v58 }
 0x147   : > { %1782 = vmatmul.mubr.bf16.gmra.mxu1 %v1845_v59 }
 0x148   : > { %1785 = vmatprep.mubr.bf16.mxu1 %v1846_v60 }
 0x14f   : > { %1786 = vmatmul.mubr.bf16.gmra.mxu1 %v1847_v61 }
 0x150   : > { %1789 = vmatprep.mubr.bf16.mxu1 %v1848_v62 }
 0x157   : > { %1790 = vmatmul.mubr.bf16.gmra.mxu1 %v1849_v63 }
 0x1ff   : > { %v1779_v0 = vpop.f32.mrf.mxu1 }
 0x200   : > { %969 = vst [vmem:[#allocation4 + $0x58] sm:$0xff] %v1779_v0 }
 0x201   : > { %v888_v1 = vpop.f32.mrf.mxu1 }
 0x202   : > { %967 = vst [vmem:[#allocation4 + $0x30] sm:$0xff] %v888_v1 }
 0x203   : > { %v1780_v2 = vpop.f32.mrf.mxu1 }
 0x204   : > { %970 = vst [vmem:[#allocation4 + $0x18] sm:$0xff] %v1780_v2 }
 0x205   : > { %v891_v3 = vpop.f32.mrf.mxu1 }
 0x206   : > { %968 = vst [vmem:[#allocation4] sm:$0xff] %v891_v3 }
 0x207   : > { %v1783_v4 = vpop.f32.mrf.mxu1  ;;  %v991_v21 = vld [vmem:[#allocation4 + $0x58] sm:$0xff] (%p315_p4) }
 0x208   : > { %973 = vst [vmem:[#allocation4 + $0x8] sm:$0xff] %v1783_v4  ;;  %v1014_v24 = vadd.f32 (%p315_p4), %v1542_v18, %v991_v21 }
 0x209   : > { %v904_v5 = vpop.f32.mrf.mxu1  ;;  %v989_v16 = vld [vmem:[#allocation4 + $0x30] sm:$0xff] (%p315_p4) }
 0x20a   : > { %971 = vst [vmem:[#allocation4 + $0x50] sm:$0xff] %v904_v5  ;;  %v1012_v19 = vadd.f32 (%p315_p4), %v1542_v18, %v989_v16  ;;  %v1030_v37 = vmax.f32 (%p315_p4), %v1014_v24, 0.0 }
 0x20b   : > { %v1784_v6 = vpop.f32.mrf.mxu1  ;;  %v992_v22 = vld [vmem:[#allocation4 + $0x18] sm:$0xff] (%p315_p4) }
 0x20c   : > { %974 = vst [vmem:[#allocation4 + $0x48] sm:$0xff] %v1784_v6  ;;  %v1015_v25 = vadd.f32 (%p315_p4), %v1542_v18, %v992_v22  ;;  %v1028_v30 = vmax.f32 (%p315_p4), %v1012_v19, 0.0 }
 0x20d   : > { %v907_v7 = vpop.f32.mrf.mxu1  ;;  %v990_v17 = vld [vmem:[#allocation4] sm:$0xff] (%p315_p4) }
 0x20e   : > { %972 = vst [vmem:[#allocation4 + $0x68] sm:$0xff] %v907_v7  ;;  %v1013_v20 = vadd.f32 (%p315_p4), %v1542_v18, %v990_v17  ;;  %v1031_v38 = vmax.f32 (%p315_p4), %v1015_v25, 0.0 }
 0x20f   : > { %v1787_v8 = vpop.f32.mrf.mxu1  ;;  %v995_v28 = vld [vmem:[#allocation4 + $0x8] sm:$0xff] (%p315_p4) }
 0x210   : > { %977 = vst [vmem:[#allocation4 + $0x10] sm:$0xff] %v1787_v8  ;;  %v1029_v31 = vmax.f32 (%p315_p4), %v1013_v20, 0.0  ;;  %v1018_v33 = vadd.f32 (%p315_p4), %v1542_v18, %v995_v28  ;;  %v1651_v48 = vpack.c.bf16 (%p315_p4), %v1031_v38, %v1030_v37 }
 0x211   : > { %v920_v9 = vpop.f32.mrf.mxu1  ;;  %v993_v23 = vld [vmem:[#allocation4 + $0x50] sm:$0xff] (%p315_p4) }
 0x212   : > { %975 = vst [vmem:[#allocation4 + $0x40] sm:$0xff] %v920_v9  ;;  %v1016_v27 = vadd.f32 (%p315_p4), %v1542_v18, %v993_v23  ;;  %v1646_v43 = vpack.c.bf16 (%p315_p4), %v1029_v31, %v1028_v30  ;;  %v1034_v45 = vmax.f32 (%p315_p4), %v1018_v33, 0.0  ;;  %1690 = vst [vmem:[#allocation2 + $0x8] sm:$0xff] (%p315_p4), %v1651_v48  }
 0x213   : > { %v1788_v10 = vpop.f32.mrf.mxu1  ;;  %v996_v29 = vld [vmem:[#allocation4 + $0x48] sm:$0xff] (%p315_p4) }
 0x214   : > { %978 = vst [vmem:[#allocation4 + $0x38] sm:$0xff] %v1788_v10  ;;  %v1032_v39 = vmax.f32 (%p315_p4), %v1016_v27, 0.0  ;;  %v1019_v40 = vadd.f32 (%p315_p4), %v1542_v18, %v996_v29  ;;  %1647 = vst [vmem:[#allocation2] sm:$0xff] (%p315_p4), %v1646_v43  }
 0x215   : > { %v923_v11 = vpop.f32.mrf.mxu1  ;;  %v994_v26 = vld [vmem:[#allocation4 + $0x68] sm:$0xff] (%p315_p4) }
 0x216   : > { %976 = vst [vmem:[#allocation4 + $0x20] sm:$0xff] %v923_v11  ;;  %v1017_v32 = vadd.f32 (%p315_p4), %v1542_v18, %v994_v26  ;;  %v1035_v49 = vmax.f32 (%p315_p4), %v1019_v40, 0.0 }
 0x217   : > { %v1791_v12 = vpop.f32.mrf.mxu1  ;;  %v999_v36 = vld [vmem:[#allocation4 + $0x10] sm:$0xff] (%p315_p4) }
 0x218   : > { %981 = vst [vmem:[#allocation4 + $0x78] sm:$0xff] %v1791_v12  ;;  %v1033_v44 = vmax.f32 (%p315_p4), %v1017_v32, 0.0  ;;  %v1022_v51 = vadd.f32 (%p315_p4), %v1542_v18, %v999_v36  ;;  %v1661_v58 = vpack.c.bf16 (%p315_p4), %v1035_v49, %v1034_v45 }
 0x219   : > { %v936_v13 = vpop.f32.mrf.mxu1  ;;  %v997_v34 = vld [vmem:[#allocation4 + $0x40] sm:$0xff] (%p315_p4) }
 0x21a   : > { %979 = vst [vmem:[#allocation4 + $0x60] sm:$0xff] %v936_v13  ;;  %988 = sbr.rel (!%p315_p4) target bundleno = 557 (0x22d), region = 52  ;;  %v1020_v46 = vadd.f32 (%p315_p4), %v1542_v18, %v997_v34  ;;  %v1656_v54 = vpack.c.bf16 (%p315_p4), %v1033_v44, %v1032_v39  ;;  %v1038_v60 = vmax.f32 (%p315_p4), %v1022_v51, 0.0  ;;  %1692 = vst [vmem:[#allocation2 + $0x18] sm:$0xff] (%p315_p4), %v1661_v58  }
 0x21b   : > { %v1792_v14 = vpop.f32.mrf.mxu1  ;;  %v1000_v41 = vld [vmem:[#allocation4 + $0x38] sm:$0xff] (%p315_p4) }
 0x21c   : > { %982 = vst [vmem:[#allocation4 + $0x28] sm:$0xff] %v1792_v14  ;;  %v1036_v55 = vmax.f32 (%p315_p4), %v1020_v46, 0.0  ;;  %v1023_v56 = vadd.f32 (%p315_p4), %v1542_v18, %v1000_v41  ;;  %1691 = vst [vmem:[#allocation2 + $0x10] sm:$0xff] (%p315_p4), %v1656_v54  }
 0x21d   : > { %v939_v15 = vpop.f32.mrf.mxu1  ;;  %v998_v35 = vld [vmem:[#allocation4 + $0x20] sm:$0xff] (%p315_p4) }
 0x21e   : > { %980 = vst [vmem:[#allocation4 + $0x70] sm:$0xff] %v939_v15  ;;  %v1021_v50 = vadd.f32 (%p315_p4), %v1542_v18, %v998_v35  ;;  %v1039_v62 = vmax.f32 (%p315_p4), %v1023_v56, 0.0 }
 0x21f   : > { %v1003_v52 = vld [vmem:[#allocation4 + $0x78] sm:$0xff] }
 0x220   : > { %v1037_v59 = vmax.f32 %v1021_v50, 0.0  ;;  %v1026_v0 = vadd.f32 %v1542_v18, %v1003_v52  ;;  %v1671_v4 = vpack.c.bf16 %v1039_v62, %v1038_v60 }
 0x221   : > { %v1001_v42 = vld [vmem:[#allocation4 + $0x60] sm:$0xff] }
 0x222   : > { %v1024_v57 = vadd.f32 %v1542_v18, %v1001_v42  ;;  %v1666_v2 = vpack.c.bf16 %v1037_v59, %v1036_v55  ;;  %v1042_v5 = vmax.f32 %v1026_v0, 0.0  ;;  %1694 = vst [vmem:[#allocation2 + $0x28] sm:$0xff] %v1671_v4  }
 0x223   : > { %v1004_v53 = vld [vmem:[#allocation4 + $0x28] sm:$0xff] }
 0x224   : > { %v1040_v63 = vmax.f32 %v1024_v57, 0.0  ;;  %v1027_v1 = vadd.f32 %v1542_v18, %v1004_v53  ;;  %1693 = vst [vmem:[#allocation2 + $0x20] sm:$0xff] %v1666_v2  }
 0x225   : > { %v1002_v47 = vld [vmem:[#allocation4 + $0x70] sm:$0xff] }
 0x226   : > { %v1025_v61 = vadd.f32 %v1542_v18, %v1002_v47  ;;  %v1043_v6 = vmax.f32 %v1027_v1, 0.0 }
 0x228   : > { %v1041_v3 = vmax.f32 %v1025_v61, 0.0  ;;  %v1681_v8 = vpack.c.bf16 %v1043_v6, %v1042_v5 }
 0x22a   : > { %v1676_v7 = vpack.c.bf16 %v1041_v3, %v1040_v63  ;;  %1696 = vst [vmem:[#allocation2 + $0x38] sm:$0xff] %v1681_v8  }
 0x22c   : > { %1695 = vst [vmem:[#allocation2 + $0x30] sm:$0xff] %v1676_v7  }
 0x22d PF: > { %p1128_p6 = scmp.eq.s32.totalorder %s1928_s15, 2 }
 0x22e   : > { %v1133_v9 = vld [vmem:[#allocation4 + $0x30] sm:$0xff] (%p1128_p6)  ;;  %v1560_v10 = vld [vmem:[%s1990_s23] ss:$0 sm:$0xff] (%p1128_p6)  ;;  %v1172_v11 = vlaneseq (%p1128_p6)  ;;  %v1135_v12 = vld [vmem:[#allocation4 + $0x58] sm:$0xff] (%p1128_p6) }
 0x22f   : > { %1132 = sbr.rel (!%p1128_p6) target bundleno = 909 (0x38d), region = 56  ;;  %v1156_v13 = vadd.f32 (%p1128_p6), %v1560_v10, %v1133_v9  ;;  %v1158_v14 = vadd.f32 (%p1128_p6), %v1560_v10, %v1135_v12  ;;  %v1134_v15 = vld [vmem:[#allocation4] sm:$0xff] (%p1128_p6)  ;;  %v1136_v16 = vld [vmem:[#allocation4 + $0x18] sm:$0xff] (%p1128_p6)  ;;  %v1137_v20 = vld [vmem:[#allocation4 + $0x50] sm:$0xff] (%p1128_p6) }
 0x230   : > { %v1173_v17 = vand.u32 (%p1128_p6), 127, %v1172_v11  ;;  %v1157_v18 = vadd.f32 (%p1128_p6), %v1560_v10, %v1134_v15  ;;  %v1159_v19 = vadd.f32 (%p1128_p6), %v1560_v10, %v1136_v16  ;;  %v1138_v21 = vld [vmem:[#allocation4 + $0x68] sm:$0xff] (%p1128_p6)  ;;  %v1160_v26 = vadd.f32 (%p1128_p6), %v1560_v10, %v1137_v20  ;;  %v1141_v34 = vld [vmem:[#allocation4 + $0x40] sm:$0xff] (%p1128_p6)  ;;  %v1143_v40 = vld [vmem:[#allocation4 + $0x10] sm:$0xff] (%p1128_p6) }
 0x231   : > { %v1161_v27 = vadd.f32 (%p1128_p6), %v1560_v10, %v1138_v21  ;;  %v1139_v28 = vld [vmem:[#allocation4 + $0x8] sm:$0xff] (%p1128_p6)  ;;  %v1142_v35 = vld [vmem:[#allocation4 + $0x20] sm:$0xff] (%p1128_p6)  ;;  %v1164_v38 = vadd.f32 (%p1128_p6), %v1560_v10, %v1141_v34  ;;  %v1144_v41 = vld [vmem:[#allocation4 + $0x38] sm:$0xff] (%p1128_p6)  ;;  %v1166_v44 = vadd.f32 (%p1128_p6), %v1560_v10, %v1143_v40 }
 0x232   : > { %vm1174_vm0 = vcmp.lt.s32.totalorder (%p1128_p6), %v1173_v17, 8  ;;  %v1140_v29 = vld [vmem:[#allocation4 + $0x48] sm:$0xff] (%p1128_p6)  ;;  %v1162_v32 = vadd.f32 (%p1128_p6), %v1560_v10, %v1139_v28  ;;  %v1165_v39 = vadd.f32 (%p1128_p6), %v1560_v10, %v1142_v35  ;;  %v1167_v45 = vadd.f32 (%p1128_p6), %v1560_v10, %v1144_v41  ;;  %v1145_v46 = vld [vmem:[#allocation4 + $0x60] sm:$0xff] (%p1128_p6)  ;;  %v1147_v52 = vld [vmem:[#allocation4 + $0x78] sm:$0xff] (%p1128_p6) }
 0x233   : > { %v1175_v22 = vsel (%p1128_p6), %vm1174_vm0, %v1156_v13, -1e+30  ;;  %v1177_v23 = vsel (%p1128_p6), %vm1174_vm0, %v1158_v14, -1e+30  ;;  %v1176_v24 = vsel (%p1128_p6), %vm1174_vm0, %v1157_v18, -1e+30  ;;  %v1163_v33 = vadd.f32 (%p1128_p6), %v1560_v10, %v1140_v29 }
 0x234   : > { %1191 = vmax.xlane.f32.xlu0 %v1175_v22  ;;  %1195 = vmax.xlane.f32.xlu1 %v1177_v23  ;;  %v1178_v25 = vsel %vm1174_vm0, %v1159_v19, -1e+30  ;;  %v1179_v30 = vsel %vm1174_vm0, %v1160_v26, -1e+30  ;;  %v1180_v31 = vsel %vm1174_vm0, %v1161_v27, -1e+30  ;;  %v1168_v50 = vadd.f32 %v1560_v10, %v1145_v46 }
 0x235   : > { %v1181_v36 = vsel %vm1174_vm0, %v1162_v32, -1e+30  ;;  %v1182_v37 = vsel %vm1174_vm0, %v1163_v33, -1e+30  ;;  %v1183_v42 = vsel %vm1174_vm0, %v1164_v38, -1e+30  ;;  %v1170_v56 = vadd.f32 %v1560_v10, %v1147_v52 }
 0x236   : > { %v1184_v43 = vsel %vm1174_vm0, %v1165_v39, -1e+30  ;;  %v1146_v47 = vld [vmem:[#allocation4 + $0x70] sm:$0xff]  ;;  %v1185_v48 = vsel %vm1174_vm0, %v1166_v44, -1e+30  ;;  %v1148_v53 = vld [vmem:[#allocation4 + $0x28] sm:$0xff] }
 0x237   : > { %v1186_v49 = vsel %vm1174_vm0, %v1167_v45, -1e+30  ;;  %v1169_v51 = vadd.f32 %v1560_v10, %v1146_v47  ;;  %v2072_v54 = vsel %vm1174_vm0, %v1168_v50, -1e+30  ;;  %v1171_v57 = vadd.f32 %v1560_v10, %v1148_v53 }
 0x238   : > { %1193 = vmax.xlane.f32.xlu0 %v1176_v24  ;;  %1197 = vmax.xlane.f32.xlu1 %v1178_v25  ;;  %v2080_v58 = vsel %vm1174_vm0, %v1170_v56, -1e+30 }
 0x239   : > { %v2075_v55 = vsel %vm1174_vm0, %v1169_v51, -1e+30  ;;  %v2083_v59 = vsel %vm1174_vm0, %v1171_v57, -1e+30 }
 0x23c   : > { %1199 = vmax.xlane.f32.xlu0 %v1179_v30  ;;  %1201 = vmax.xlane.f32.xlu1 %v1180_v31 }
 0x240   : > { %1203 = vmax.xlane.f32.xlu0 %v1181_v36  ;;  %1205 = vmax.xlane.f32.xlu1 %v1182_v37 }
 0x244   : > { %1207 = vmax.xlane.f32.xlu0 %v1183_v42  ;;  %1209 = vmax.xlane.f32.xlu1 %v1184_v43 }
 0x248   : > { %1211 = vmax.xlane.f32.xlu0 %v1185_v48  ;;  %1213 = vmax.xlane.f32.xlu1 %v1186_v49 }
 0x24c   : > { %1215 = vmax.xlane.f32.xlu0 %v2072_v54  ;;  %1217 = vmax.xlane.f32.xlu1 %v2075_v55 }
 0x250   : > { %1219 = vmax.xlane.f32.xlu0 %v2080_v58  ;;  %1221 = vmax.xlane.f32.xlu1 %v2083_v59 }
 0x2bd   : > { %v1192_v60 = vpop.xlane.xlu0 %1191  ;;  %v1196_v61 = vpop.xlane.xlu1 %1195 }
 0x2be   : > { %v2087_v62 = vsub.f32 %v1175_v22, %v1192_v60  ;;  %v2089_v63 = vsub.f32 %v1177_v23, %v1196_v61 }
 0x2c0   : > { %v1239_v0 = vmul.f32 1.442695, %v2087_v62  ;;  %v1243_v1 = vmul.f32 1.442695, %v2089_v63 }
 0x2c1   : > { %v1194_v2 = vpop.xlane.xlu0 %1193  ;;  %v1198_v3 = vpop.xlane.xlu1 %1197 }
 0x2c2   : > { %1850 = vpow2.f32 %v1239_v0  ;;  %v2093_v4 = vsub.f32 %v1176_v24, %v1194_v2  ;;  %v2095_v5 = vsub.f32 %v1178_v25, %v1198_v3 }
 0x2c3   : > { %1852 = vpow2.f32 %v1243_v1 }
 0x2c4   : > { %v1241_v6 = vmul.f32 1.442695, %v2093_v4  ;;  %v1245_v7 = vmul.f32 1.442695, %v2095_v5 }
 0x2c5   : > { %v1200_v8 = vpop.xlane.xlu0 %1199  ;;  %v1202_v9 = vpop.xlane.xlu1 %1201 }
 0x2c6   : > { %1854 = vpow2.f32 %v1241_v6  ;;  %v2099_v10 = vsub.f32 %v1179_v30, %v1200_v8  ;;  %v2101_v11 = vsub.f32 %v1180_v31, %v1202_v9 }
 0x2c7   : > { %1856 = vpow2.f32 %v1245_v7 }
 0x2c8   : > { %v1247_v12 = vmul.f32 1.442695, %v2099_v10  ;;  %v1249_v13 = vmul.f32 1.442695, %v2101_v11 }
 0x2c9   : > { %v1204_v14 = vpop.xlane.xlu0 %1203  ;;  %v1206_v15 = vpop.xlane.xlu1 %1205 }
 0x2ca   : > { %1858 = vpow2.f32 %v1247_v12  ;;  %v2105_v16 = vsub.f32 %v1181_v36, %v1204_v14  ;;  %v2107_v17 = vsub.f32 %v1182_v37, %v1206_v15 }
 0x2cb   : > { %1860 = vpow2.f32 %v1249_v13 }
 0x2cc   : > { %v1251_v18 = vmul.f32 1.442695, %v2105_v16  ;;  %v1253_v19 = vmul.f32 1.442695, %v2107_v17 }
 0x2cd   : > { %v1208_v20 = vpop.xlane.xlu0 %1207  ;;  %v1210_v21 = vpop.xlane.xlu1 %1209 }
 0x2ce   : > { %1862 = vpow2.f32 %v1251_v18  ;;  %v2111_v22 = vsub.f32 %v1183_v42, %v1208_v20  ;;  %v2113_v23 = vsub.f32 %v1184_v43, %v1210_v21 }
 0x2cf   : > { %v1851_v24 = vpop.eup %1850  ;;  %1864 = vpow2.f32 %v1253_v19 }
 0x2d0   : > { %v1255_v25 = vmul.f32 1.442695, %v2111_v22  ;;  %1271 = vadd.xlane.f32.xlu0 %v1851_v24  ;;  %v1257_v26 = vmul.f32 1.442695, %v2113_v23  ;;  %v1853_v27 = vpop.eup %1852 }
 0x2d1   : > { %v1212_v28 = vpop.xlane.xlu0 %1211  ;;  %v1214_v29 = vpop.xlane.xlu1 %1213 }
 0x2d2   : > { %1866 = vpow2.f32 %v1255_v25  ;;  %v2117_v30 = vsub.f32 %v1185_v48, %v1212_v28  ;;  %v2119_v31 = vsub.f32 %v1186_v49, %v1214_v29 }
 0x2d3   : > { %v1855_v32 = vpop.eup %1854  ;;  %1868 = vpow2.f32 %v1257_v26 }
 0x2d4   : > { %v1259_v33 = vmul.f32 1.442695, %v2117_v30  ;;  %1275 = vadd.xlane.f32.xlu0 %v1853_v27  ;;  %1273 = vadd.xlane.f32.xlu1 %v1855_v32  ;;  %v1261_v34 = vmul.f32 1.442695, %v2119_v31  ;;  %v1857_v35 = vpop.eup %1856 }
 0x2d5   : > { %v1216_v36 = vpop.xlane.xlu0 %1215  ;;  %v1218_v37 = vpop.xlane.xlu1 %1217 }
 0x2d6   : > { %1870 = vpow2.f32 %v1259_v33  ;;  %v2124_v38 = vsub.f32 %v2072_v54, %v1216_v36  ;;  %v2127_v39 = vsub.f32 %v2075_v55, %v1218_v37 }
 0x2d7   : > { %v1859_v40 = vpop.eup %1858  ;;  %1872 = vpow2.f32 %v1261_v34 }
 0x2d8   : > { %v1263_v41 = vmul.f32 1.442695, %v2124_v38  ;;  %1277 = vadd.xlane.f32.xlu1 %v1857_v35  ;;  %1279 = vadd.xlane.f32.xlu0 %v1859_v40  ;;  %v1265_v42 = vmul.f32 1.442695, %v2127_v39  ;;  %v1861_v43 = vpop.eup %1860 }
 0x2d9   : > { %v1220_v44 = vpop.xlane.xlu0 %1219  ;;  %v1222_v45 = vpop.xlane.xlu1 %1221 }
 0x2da   : > { %1874 = vpow2.f32 %v1263_v41  ;;  %v2132_v46 = vsub.f32 %v2080_v58, %v1220_v44  ;;  %v2135_v47 = vsub.f32 %v2083_v59, %v1222_v45 }
 0x2db   : > { %v1863_v48 = vpop.eup %1862  ;;  %1876 = vpow2.f32 %v1265_v42 }
 0x2dc   : > { %v1267_v49 = vmul.f32 1.442695, %v2132_v46  ;;  %1281 = vadd.xlane.f32.xlu1 %v1861_v43  ;;  %1283 = vadd.xlane.f32.xlu0 %v1863_v48  ;;  %v1269_v50 = vmul.f32 1.442695, %v2135_v47  ;;  %v1865_v51 = vpop.eup %1864 }
 0x2de   : > { %1878 = vpow2.f32 %v1267_v49 }
 0x2df   : > { %v1867_v52 = vpop.eup %1866  ;;  %1880 = vpow2.f32 %v1269_v50 }
 0x2e0   : > { %1285 = vadd.xlane.f32.xlu1 %v1865_v51  ;;  %1287 = vadd.xlane.f32.xlu0 %v1867_v52  ;;  %v1869_v53 = vpop.eup %1868 }
 0x2e3   : > { %v1871_v54 = vpop.eup %1870 }
 0x2e4   : > { %1289 = vadd.xlane.f32.xlu1 %v1869_v53  ;;  %1291 = vadd.xlane.f32.xlu0 %v1871_v54  ;;  %v1873_v55 = vpop.eup %1872 }
 0x2e7   : > { %v1875_v56 = vpop.eup %1874 }
 0x2e8   : > { %1293 = vadd.xlane.f32.xlu1 %v1873_v55  ;;  %1295 = vadd.xlane.f32.xlu0 %v1875_v56  ;;  %v1877_v57 = vpop.eup %1876 }
 0x2eb   : > { %v1879_v58 = vpop.eup %1878 }
 0x2ec   : > { %1297 = vadd.xlane.f32.xlu1 %v1877_v57  ;;  %1299 = vadd.xlane.f32.xlu0 %v1879_v58  ;;  %v1881_v59 = vpop.eup %1880 }
 0x2f0   : > { %1301 = vadd.xlane.f32.xlu1 %v1881_v59 }
 0x359   : > { %v1272_v60 = vpop.xlane.xlu0 %1271 }
 0x35a   : > { %1882 = vlog2.f32 %v1272_v60 }
 0x35d   : > { %v1274_v61 = vpop.xlane.xlu1 %1273  ;;  %v1276_v0 = vpop.xlane.xlu0 %1275 }
 0x35e   : > { %1884 = vlog2.f32 %v1274_v61 }
 0x35f   : > { %1886 = vlog2.f32 %v1276_v0 }
 0x361   : > { %v1278_v1 = vpop.xlane.xlu1 %1277  ;;  %v1280_v2 = vpop.xlane.xlu0 %1279 }
 0x362   : > { %1888 = vlog2.f32 %v1278_v1 }
 0x363   : > { %1890 = vlog2.f32 %v1280_v2 }
 0x365   : > { %v1282_v3 = vpop.xlane.xlu1 %1281  ;;  %v1284_v6 = vpop.xlane.xlu0 %1283 }
 0x366   : > { %1892 = vlog2.f32 %v1282_v3 }
 0x367   : > { %v1883_v7 = vpop.eup %1882  ;;  %1894 = vlog2.f32 %v1284_v6 }
 0x368   : > { %v1304_v8 = vmul.f32 0.6931472, %v1883_v7 }
 0x369   : > { %v1286_v9 = vpop.xlane.xlu1 %1285  ;;  %v1288_v12 = vpop.xlane.xlu0 %1287 }
 0x36a   : > { %v1335_v13 = vsub.f32 %v2087_v62, %v1304_v8  ;;  %1896 = vlog2.f32 %v1286_v9 }
 0x36b   : > { %v1885_v14 = vpop.eup %1884  ;;  %1898 = vlog2.f32 %v1288_v12 }
 0x36c   : > { %v1887_v15 = vpop.eup %1886  ;;  %1351 = vst [vmem:[%s2216_s4] sm:$0xff] %v1335_v13  ;;  %v1306_v18 = vmul.f32 0.6931472, %v1885_v14 }
 0x36d   : > { %v1308_v19 = vmul.f32 0.6931472, %v1887_v15  ;;  %v1290_v20 = vpop.xlane.xlu1 %1289  ;;  %v1292_v21 = vpop.xlane.xlu0 %1291 }
 0x36e   : > { %v1336_v24 = vsub.f32 %v2093_v4, %v1306_v18  ;;  %1900 = vlog2.f32 %v1290_v20 }
 0x36f   : > { %v1889_v25 = vpop.eup %1888  ;;  %v1337_v26 = vsub.f32 %v2089_v63, %v1308_v19  ;;  %1902 = vlog2.f32 %v1292_v21 }
 0x370   : > { %v1891_v62 = vpop.eup %1890  ;;  %1352 = vst [vmem:[%s2216_s4 + $0x8] sm:$0xff] %v1336_v24  ;;  %v1310_v27 = vmul.f32 0.6931472, %v1889_v25 }
 0x371   : > { %1353 = vst [vmem:[%s2216_s4 + $0x10] sm:$0xff] %v1337_v26  ;;  %v1312_v28 = vmul.f32 0.6931472, %v1891_v62  ;;  %v1294_v29 = vpop.xlane.xlu1 %1293  ;;  %v1296_v32 = vpop.xlane.xlu0 %1295 }
 0x372   : > { %v1338_v4 = vsub.f32 %v2095_v5, %v1310_v27  ;;  %1904 = vlog2.f32 %v1294_v29 }
 0x373   : > { %v1893_v33 = vpop.eup %1892  ;;  %v1339_v63 = vsub.f32 %v2099_v10, %v1312_v28  ;;  %1906 = vlog2.f32 %v1296_v32 }
 0x374   : > { %v1895_v34 = vpop.eup %1894  ;;  %1354 = vst [vmem:[%s2216_s4 + $0x18] sm:$0xff] %v1338_v4  ;;  %v1314_v35 = vmul.f32 0.6931472, %v1893_v33 }
 0x375   : > { %1355 = vst [vmem:[%s2216_s4 + $0x20] sm:$0xff] %v1339_v63  ;;  %v1316_v36 = vmul.f32 0.6931472, %v1895_v34  ;;  %v1298_v37 = vpop.xlane.xlu1 %1297  ;;  %v1300_v40 = vpop.xlane.xlu0 %1299 }
 0x376   : > { %v1340_v5 = vsub.f32 %v2101_v11, %v1314_v35  ;;  %1908 = vlog2.f32 %v1298_v37 }
 0x377   : > { %v1897_v41 = vpop.eup %1896  ;;  %v1341_v10 = vsub.f32 %v2105_v16, %v1316_v36  ;;  %1910 = vlog2.f32 %v1300_v40 }
 0x378   : > { %v1899_v42 = vpop.eup %1898  ;;  %1356 = vst [vmem:[%s2216_s4 + $0x28] sm:$0xff] %v1340_v5  ;;  %v1318_v43 = vmul.f32 0.6931472, %v1897_v41 }
 0x379   : > { %1357 = vst [vmem:[%s2216_s4 + $0x30] sm:$0xff] %v1341_v10  ;;  %v1320_v44 = vmul.f32 0.6931472, %v1899_v42  ;;  %v1302_v45 = vpop.xlane.xlu1 %1301 }
 0x37a   : > { %v1342_v48 = vsub.f32 %v2107_v17, %v1318_v43  ;;  %1912 = vlog2.f32 %v1302_v45 }
 0x37b   : > { %v1901_v11 = vpop.eup %1900  ;;  %v1343_v49 = vsub.f32 %v2111_v22, %v1320_v44 }
 0x37c   : > { %v1903_v16 = vpop.eup %1902  ;;  %1358 = vst [vmem:[%s2216_s4 + $0x38] sm:$0xff] %v1342_v48  ;;  %v1322_v50 = vmul.f32 0.6931472, %v1901_v11 }
 0x37d   : > { %1359 = vst [vmem:[%s2216_s4 + $0x40] sm:$0xff] %v1343_v49  ;;  %v1324_v51 = vmul.f32 0.6931472, %v1903_v16 }
 0x37e   : > { %v1344_v52 = vsub.f32 %v2113_v23, %v1322_v50 }
 0x37f   : > { %v1905_v53 = vpop.eup %1904  ;;  %v1345_v17 = vsub.f32 %v2117_v30, %v1324_v51 }
 0x380   : > { %v1907_v54 = vpop.eup %1906  ;;  %1360 = vst [vmem:[%s2216_s4 + $0x48] sm:$0xff] %v1344_v52  ;;  %v1326_v22 = vmul.f32 0.6931472, %v1905_v53 }
 0x381   : > { %1361 = vst [vmem:[%s2216_s4 + $0x50] sm:$0xff] %v1345_v17  ;;  %v1328_v55 = vmul.f32 0.6931472, %v1907_v54 }
 0x382   : > { %v1346_v56 = vsub.f32 %v2119_v31, %v1326_v22 }
 0x383   : > { %v1909_v57 = vpop.eup %1908  ;;  %v1347_v58 = vsub.f32 %v2124_v38, %v1328_v55 }
 0x384   : > { %v1911_v23 = vpop.eup %1910  ;;  %1362 = vst [vmem:[%s2216_s4 + $0x58] sm:$0xff] %v1346_v56  ;;  %v1330_v30 = vmul.f32 0.6931472, %v1909_v57 }
 0x385   : > { %1363 = vst [vmem:[%s2216_s4 + $0x60] sm:$0xff] %v1347_v58  ;;  %v1332_v59 = vmul.f32 0.6931472, %v1911_v23 }
 0x386   : > { %v1348_v60 = vsub.f32 %v2127_v39, %v1330_v30 }
 0x387   : > { %v1913_v61 = vpop.eup %1912  ;;  %v1349_v0 = vsub.f32 %v2132_v46, %v1332_v59 }
 0x388   : > { %1364 = vst [vmem:[%s2216_s4 + $0x68] sm:$0xff] %v1348_v60  ;;  %v1334_v31 = vmul.f32 0.6931472, %v1913_v61 }
 0x389   : > { %1365 = vst [vmem:[%s2216_s4 + $0x70] sm:$0xff] %v1349_v0 }
 0x38a   : > { %v1350_v38 = vsub.f32 %v2135_v47, %v1334_v31 }
 0x38c   : > { %1366 = vst [vmem:[%s2216_s4 + $0x78] sm:$0xff] %v1350_v38 }
 0x38d PF: > { %s14_s17 = sadd.s32 1, %s1936_s17   ;;  %s2217_s15 = smov %s1932_s16 }
 0x38e   : > { %p11_p7 = scmp.ge.s32.totalorder %s14_s17, 5   ;;  %s2218_s16 = smov %s2220_s18 }
 0x390   :  { %13 = sbr.rel (!%p11_p7) target bundleno = 2 (0x2), region = 100 }

</bundles_post_ra>
